<compile_context>
chip_gen: v7x
topology: tpu7x:2x2x1
jax: 0.10.0
libtpu: 0.0.40
codegen_flags: <defaults>
</compile_context>

<pallas_src>
import jax
import jax.numpy as jnp
from jax.experimental import pallas as pl
from jax.experimental.pallas import tpu as pltpu

_EPS = 1e-5
_VMEM_LIMIT = 32 * 1024 * 1024  # explicit scoped-VMEM budget (fits v5e/v6e/v7x)

_VSPEC = pl.BlockSpec(memory_space=pltpu.MemorySpace.VMEM)
_SSPEC = pl.BlockSpec(memory_space=pltpu.MemorySpace.SMEM)


# ----------------------------------------------------------------------------
# Kernel 1: point-wise MLP feature extractor (ball), src + ref fused in one call
# ----------------------------------------------------------------------------
def _feat_ball_kernel(xyz_s_ref, nrm_s_ref, xyz_r_ref, nrm_r_ref,
                      w1_ref, b1_ref, w2_ref, b2_ref,
                      fs_out, fr_out):
    w1 = w1_ref[...]                       # (6, C) f32
    b1 = b1_ref[...]                       # (1, C) f32
    w2 = w2_ref[...]                       # (C, C) bf16 (pre-cast in wrapper)
    b2 = b2_ref[...]                       # (1, C) f32

    def mlp(x, nr, out_ref):               # x, nr: (M, 3) f32, points flattened over B
        # 6-deep contraction as VPU broadcast-FMAs (avoids a tiny MXU matmul).
        h = (b1
             + x[:, 0:1] * w1[0:1, :] + x[:, 1:2] * w1[1:2, :] + x[:, 2:3] * w1[2:3, :]
             + nr[:, 0:1] * w1[3:4, :] + nr[:, 1:2] * w1[4:5, :] + nr[:, 2:3] * w1[5:6, :])
        h = jnp.maximum(h, 0.0)
        y = jnp.dot(h.astype(jnp.bfloat16), w2,
                    preferred_element_type=jnp.float32) + b2
        # bf16 round trip to the iteration kernel (halves HBM traffic); C=128
        # keeps the store lane-dense.
        out_ref[...] = y.astype(jnp.bfloat16)

    mlp(xyz_s_ref[...], nrm_s_ref[...], fs_out)
    mlp(xyz_r_ref[...], nrm_r_ref[...], fr_out)


def feat_extractor_ball(xyz_src_f, nrm_src_f, xyz_ref_f, nrm_ref_f, params):
    # TODO(synk): original feat_extractor_ball architecture is not provided in
    # the reference; deterministic point-wise 2-layer MLP stand-in.
    w1, b1, w2, b2 = params
    w2 = w2.astype(jnp.bfloat16)           # pre-cast: half the weight DMA bytes
    Ms = xyz_src_f.shape[0]
    Mr = xyz_ref_f.shape[0]
    C = w2.shape[1]
    return pl.pallas_call(
        _feat_ball_kernel,
        out_shape=(jax.ShapeDtypeStruct((Ms, C), jnp.bfloat16),
                   jax.ShapeDtypeStruct((Mr, C), jnp.bfloat16)),
        in_specs=[_VSPEC] * 8,
        out_specs=(_VSPEC, _VSPEC),
        compiler_params=pltpu.CompilerParams(vmem_limit_bytes=_VMEM_LIMIT),
    )(xyz_src_f, nrm_src_f, xyz_ref_f, nrm_ref_f, w1, b1, w2, b2)


# ----------------------------------------------------------------------------
# Kernel 2: fused per-iteration chain
#   feature refinement (src & ref) -> L2 match -> affinity -> Sinkhorn ->
#   weighted_ref + centroids + covariance.
# ----------------------------------------------------------------------------
def _make_iter_kernel(B, J, K, n_sk_iters):
    def kernel(scal_ref,                       # SMEM (B, 2): [beta, alpha] per batch
               xyz_src_ref,                    # (B*J, 3)  original src points
               xyz_srct_ref,                   # (B*J, 3)  transformed src points
               xyz_refp_ref,                   # (B*K, 3)  ref points
               fsrc_ref, fref_ref,             # (B*J, C) / (B*K, C) bf16
               wx_ref, wf_ref, bias_ref,       # (3, C) f32, (C, C) bf16, (1, C) f32
               fsrc_out, fref_out,             # (B*J, C) / (B*K, C) bf16
               perm_out,                       # (B, J, K) f32
               stats_out):                     # (B, 5, 3) f32: rows 0-2 cov, 3 c_a, 4 c_b
        wx = wx_ref[...]                       # (3, C)
        wf = wf_ref[...]                       # (C, C) bf16 MXU operand
        bias = bias_ref[...]                   # (1, C)

        # ---- feature refinement (point-wise linear(x)+linear(f)+ReLU stand-in) --
        # TODO(synk): original feat_extractor_xyz architecture is not provided.
        def refine(xyz2, feat2):
            # 3-deep contraction on the VPU (broadcast FMAs), C-deep on the MXU
            # as a single flattened (B*N, C) @ (C, C) matmul.
            h = (bias
                 + xyz2[:, 0:1] * wx[0:1, :]
                 + xyz2[:, 1:2] * wx[1:2, :]
                 + xyz2[:, 2:3] * wx[2:3, :])
            h = h + jnp.dot(feat2, wf, preferred_element_type=jnp.float32)
            return jnp.maximum(h, 0.0)

        fs_all = refine(xyz_srct_ref[...], fsrc_ref[...])      # (B*J, C) f32
        fr_all = refine(xyz_refp_ref[...], fref_ref[...])      # (B*K, C) f32
        # Lane-dense (C = 128) single-slab stores; bf16 for the HBM round trip.
        fsrc_out[...] = fs_all.astype(jnp.bfloat16)
        fref_out[...] = fr_all.astype(jnp.bfloat16)

        # Per-batch tail, statically unrolled (B is small); all 2-D ops.
        for b in range(B):
            beta = scal_ref[b, 0]
            alpha = scal_ref[b, 1]
            fs = fs_all[b * J:(b + 1) * J, :]                  # (J, C)
            fr = fr_all[b * K:(b + 1) * K, :]                  # (K, C)

            # ---- match_features('l2') + compute_affinity ----
            cross = jax.lax.dot_general(
                fs, fr, (((1,), (1,)), ((), ())),
                preferred_element_type=jnp.float32)            # (J, K)
            sq_s = jnp.sum(fs * fs, axis=1, keepdims=True)     # (J, 1)
            sq_r = jnp.sum(fr * fr, axis=1)[None, :]           # (1, K)
            dist = jnp.maximum(sq_s - 2.0 * cross + sq_r, 0.0)
            aff = -beta * (dist - alpha)                       # (J, K)

            # ---- SinkhornNorm ('sum'/'sum_approx') with implicit one-padding --
            # Rows 0..J-1 are normalized first, so shifting each row by its max
            # before exp is exactly equivalent and overflow-safe.  The padded
            # column/row of ones is carried as pr/pc; the corner never
            # participates (it is excluded from both normalizations in the
            # reference as well).
            m = jnp.maximum(jnp.max(aff, axis=1, keepdims=True), 0.0)
            a = jnp.exp(aff - m)                               # (J, K)
            pr = jnp.exp(-m)                                   # pad column (J, 1)
            pc = jnp.ones((1, K), jnp.float32)                 # pad row    (1, K)
            # Note: at production J,K on v6e/v7x these row/col sums can be moved
            # onto the MXU (a @ ones / ones @ a) to unload the XLU.
            for it in range(n_sk_iters):
                last = (it + 1 == n_sk_iters)
                row_den = jnp.maximum(jnp.sum(a, axis=1, keepdims=True) + pr, 1e-30)
                inv_r = (1.0 / row_den) if last else pl.reciprocal(row_den, approx=True)
                a = a * inv_r
                pr = pr * inv_r
                col_den = jnp.maximum(jnp.sum(a, axis=0, keepdims=True) + pc, 1e-30)
                inv_c = (1.0 / col_den) if last else pl.reciprocal(col_den, approx=True)
                a = a * inv_c
                pc = pc * inv_c
            perm_out[b] = a                                    # == padded[:-1, :-1]

            # ---- rigid-fit statistics (everything before the 3x3 SVD) ----
            src_pts = xyz_src_ref[b * J:(b + 1) * J, :]        # (J, 3)
            ref_pts = xyz_refp_ref[b * K:(b + 1) * K, :]       # (K, 3)
            row_sum = jnp.sum(a, axis=1, keepdims=True)        # (J, 1) == weights
            weighted_ref = (jnp.dot(a, ref_pts, preferred_element_type=jnp.float32)
                            / (row_sum + _EPS))                # (J, 3)
            wn = row_sum / (jnp.sum(row_sum, axis=0, keepdims=True) + _EPS)
            centroid_a = jnp.sum(src_pts * wn, axis=0, keepdims=True)       # (1, 3)
            centroid_b = jnp.sum(weighted_ref * wn, axis=0, keepdims=True)  # (1, 3)
            a_c = src_pts - centroid_a
            b_c = (weighted_ref - centroid_b) * wn
            cov = jax.lax.dot_general(
                a_c, b_c, (((0,), (0,)), ((), ())),
                preferred_element_type=jnp.float32)            # (3, 3)
            # Single merged stats output (one DMA channel instead of three).
            stats_out[b, 0:3, :] = cov
            stats_out[b, 3:4, :] = centroid_a
            stats_out[b, 4:5, :] = centroid_b

    return kernel


def fused_iteration(beta, alpha, xyz_src_f, xyz_srct_f, xyz_ref_f,
                    feat_src_f, feat_ref_f, params_i, n_sk, B, J, K):
    wx, wf, bias = params_i
    wf = wf.astype(jnp.bfloat16)            # pre-cast weight for the MXU
    C = wf.shape[1]
    scal = jnp.stack([beta, alpha], axis=1).astype(jnp.float32)        # (B, 2)

    out_shape = (
        jax.ShapeDtypeStruct((B * J, C), jnp.bfloat16),   # feat_src (new)
        jax.ShapeDtypeStruct((B * K, C), jnp.bfloat16),   # feat_ref (new)
        jax.ShapeDtypeStruct((B, J, K), jnp.float32),     # perm_matrix
        jax.ShapeDtypeStruct((B, 5, 3), jnp.float32),     # cov | centroid_a | centroid_b
    )
    return pl.pallas_call(
        _make_iter_kernel(B, J, K, n_sk),
        out_shape=out_shape,
        in_specs=[_SSPEC] + [_VSPEC] * 8,
        out_specs=(_VSPEC, _VSPEC, _VSPEC, _VSPEC),
        compiler_params=pltpu.CompilerParams(vmem_limit_bytes=_VMEM_LIMIT),
    )(scal, xyz_src_f, xyz_srct_f, xyz_ref_f, feat_src_f, feat_ref_f, wx, wf, bias)


# ----------------------------------------------------------------------------
# Plain-JAX glue: SVD-based transform assembly, se3 transform, weights_net
# ----------------------------------------------------------------------------
def finish_rigid_transform(cov, centroid_a, centroid_b):
    # torch.svd: cov = u @ diag(s) @ v^T ; jnp.linalg.svd: cov = u @ diag(s) @ vh
    u, s, vh = jnp.linalg.svd(cov)
    v = jnp.swapaxes(vh, -1, -2)
    ut = jnp.swapaxes(u, -1, -2)
    rot_pos = v @ ut
    v_neg = v.at[:, :, 2].multiply(-1.0)
    rot_neg = v_neg @ ut
    det = jnp.linalg.det(rot_pos)
    rot = jnp.where(det[:, None, None] > 0, rot_pos, rot_neg)
    translation = -rot @ centroid_a[:, :, None] + centroid_b[:, :, None]
    # TODO(synk): degenerate-SVD early return (PyTorch returns None when
    # sum(s) < 1e-9) has no clean jit equivalent; skipped.
    return jnp.concatenate([rot, translation], axis=2)                 # (B, 3, 4)


def se3_transform(transform, xyz, norm):
    rot = transform[:, :, :3]
    trans = transform[:, :, 3]
    xyz_t = jnp.einsum('bij,bnj->bni', rot, xyz) + trans[:, None, :]
    norm_t = jnp.einsum('bij,bnj->bni', rot, norm)
    return xyz_t, norm_t


def weights_net(xyz_src, xyz_ref, params, num_iter):
    # TODO(synk): original weights_net architecture is not provided; deterministic
    # pooled-linear + softplus stand-in producing per-iteration beta, alpha > 0.
    w, b = params
    pooled = jnp.concatenate(
        [jnp.mean(xyz_src, axis=1), jnp.mean(xyz_ref, axis=1)], axis=-1)  # (B, 6)
    raw = pooled @ w + b
    betas = jax.nn.softplus(raw[:, :num_iter])
    alphas = jax.nn.softplus(raw[:, num_iter:])
    return betas, alphas


# ----------------------------------------------------------------------------
# CFENet forward
# ----------------------------------------------------------------------------
def cfenet_forward(points_src, points_ref, params, num_iter=3, num_sk_max_iter=5):
    B, J, _ = points_src.shape
    K = points_ref.shape[1]
    xyz_ref, norm_ref = points_ref[:, :, :3], points_ref[:, :, 3:6]
    xyz_src, norm_src = points_src[:, :, :3], points_src[:, :, 3:6]
    xyz_src_t, norm_src_t = xyz_src, norm_src

    betas, alphas = weights_net(xyz_src, xyz_ref, params['weights_net'], num_iter)

    # Flattened (points-on-sublanes) views for the point-wise kernels; J and K
    # are multiples of 8 here so the per-batch slices stay tile-aligned.
    xyz_src_f = xyz_src.reshape(B * J, 3)
    nrm_src_f = norm_src.reshape(B * J, 3)
    xyz_ref_f = xyz_ref.reshape(B * K, 3)
    nrm_ref_f = norm_ref.reshape(B * K, 3)

    feat_src_f, feat_ref_f = feat_extractor_ball(
        xyz_src_f, nrm_src_f, xyz_ref_f, nrm_ref_f, params['ball'])

    transforms = []
    all_perm_matrices = []
    for i in range(num_iter):
        n_sk = int(num_sk_max_iter * i // num_iter) + 1                # 'sum_approx'
        xyz_srct_f = xyz_src_t.reshape(B * J, 3)
        feat_src_f, feat_ref_f, perm_matrix, stats = fused_iteration(
            betas[:, i], alphas[:, i],
            xyz_src_f, xyz_srct_f, xyz_ref_f,
            feat_src_f, feat_ref_f,
            params['xyz'][i], n_sk, B, J, K)

        cov = stats[:, 0:3, :]
        centroid_a = stats[:, 3, :]
        centroid_b = stats[:, 4, :]
        transform = finish_rigid_transform(cov, centroid_a, centroid_b)
        xyz_src_t, norm_src_t = se3_transform(
            jax.lax.stop_gradient(transform), xyz_src, norm_src)

        transforms.append(transform)
        all_perm_matrices.append(perm_matrix)

    endpoints = {
        'perm_matrices': jnp.stack(all_perm_matrices),                 # (num_iter,B,J,K)
        'transforms': transforms,                                      # list of (B,3,4)
    }
    return endpoints


# ----------------------------------------------------------------------------
# Deterministic parameter init + run
# ----------------------------------------------------------------------------
def make_params(key, feat_dim, num_iter):
    ks = jax.random.split(key, 4 + num_iter * 2)
    params = {
        'ball': (
            0.1 * jax.random.normal(ks[0], (6, feat_dim), jnp.float32),
            jnp.zeros((1, feat_dim), jnp.float32),
            0.1 * jax.random.normal(ks[1], (feat_dim, feat_dim), jnp.float32),
            jnp.zeros((1, feat_dim), jnp.float32),
        ),
        'xyz': [
            (
                0.1 * jax.random.normal(ks[4 + 2 * i], (3, feat_dim), jnp.float32),
                0.1 * jax.random.normal(ks[5 + 2 * i], (feat_dim, feat_dim), jnp.float32),
                jnp.zeros((1, feat_dim), jnp.float32),
            )
            for i in range(num_iter)
        ],
        'weights_net': (
            0.1 * jax.random.normal(ks[2], (6, 2 * num_iter), jnp.float32),
            0.5 * jnp.ones((2 * num_iter,), jnp.float32),
        ),
    }
    return params


if __name__ == "__main__":
    B, J, K, C = 2, 8, 8, 128        # C = 128 keeps the feature slabs lane-dense
    NUM_ITER = 3
    NUM_SK_ITER = 5

    key = jax.random.PRNGKey(0)
    k_src, k_ref, k_par = jax.random.split(key, 3)
    points_src = jax.random.normal(k_src, (B, J, 6), jnp.float32)
    points_ref = jax.random.normal(k_ref, (B, K, 6), jnp.float32)
    params = make_params(k_par, C, NUM_ITER)

    endpoints = cfenet_forward(points_src, points_ref, params,
                               num_iter=NUM_ITER, num_sk_max_iter=NUM_SK_ITER)

    perm = jax.block_until_ready(endpoints['perm_matrices'])
    transforms = [jax.block_until_ready(t) for t in endpoints['transforms']]

    assert perm.shape == (NUM_ITER, B, J, K)
    assert all(t.shape == (B, 3, 4) for t in transforms)
    assert bool(jnp.all(jnp.isfinite(perm)))
    assert all(bool(jnp.all(jnp.isfinite(t))) for t in transforms)

    print("KERNEL_OK")
</pallas_src>

<mosaic_0001>
module attributes {stable_mosaic.version = 11 : i64} {
  func.func @_feat_ball_kernel(%arg0: memref<16x3xf32, #tpu.memory_space<vmem>>, %arg1: memref<16x3xf32, #tpu.memory_space<vmem>>, %arg2: memref<16x3xf32, #tpu.memory_space<vmem>>, %arg3: memref<16x3xf32, #tpu.memory_space<vmem>>, %arg4: memref<6x128xf32, #tpu.memory_space<vmem>>, %arg5: memref<1x128xf32, #tpu.memory_space<vmem>>, %arg6: memref<128x128xbf16, #tpu.memory_space<vmem>>, %arg7: memref<1x128xf32, #tpu.memory_space<vmem>>, %arg8: memref<16x128xbf16, #tpu.memory_space<vmem>>, %arg9: memref<16x128xbf16, #tpu.memory_space<vmem>>) attributes {dimension_semantics = [], scalar_prefetch = 0 : i64, scratch_operands = 0 : i64, tpu.core_type = #tpu.core_type<tc>} {
    %c0 = arith.constant 0 : index
    %c0_0 = arith.constant 0 : index
    %0 = vector.load %arg4[%c0, %c0_0] : memref<6x128xf32, #tpu.memory_space<vmem>>, vector<6x128xf32>
    %c0_1 = arith.constant 0 : index
    %c0_2 = arith.constant 0 : index
    %1 = vector.load %arg5[%c0_1, %c0_2] : memref<1x128xf32, #tpu.memory_space<vmem>>, vector<1x128xf32>
    %c0_3 = arith.constant 0 : index
    %c0_4 = arith.constant 0 : index
    %2 = vector.load %arg6[%c0_3, %c0_4] : memref<128x128xbf16, #tpu.memory_space<vmem>>, vector<128x128xbf16>
    %c0_5 = arith.constant 0 : index
    %c0_6 = arith.constant 0 : index
    %3 = vector.load %arg7[%c0_5, %c0_6] : memref<1x128xf32, #tpu.memory_space<vmem>>, vector<1x128xf32>
    %c0_7 = arith.constant 0 : index
    %c0_8 = arith.constant 0 : index
    %4 = vector.load %arg0[%c0_7, %c0_8] : memref<16x3xf32, #tpu.memory_space<vmem>>, vector<16x3xf32>
    %c0_9 = arith.constant 0 : index
    %c0_10 = arith.constant 0 : index
    %5 = vector.load %arg1[%c0_9, %c0_10] : memref<16x3xf32, #tpu.memory_space<vmem>>, vector<16x3xf32>
    %6 = vector.extract_strided_slice %4 {offsets = [0, 0], sizes = [16, 1], strides = [1, 1]} : vector<16x3xf32> to vector<16x1xf32>
    %7 = vector.extract_strided_slice %0 {offsets = [0, 0], sizes = [1, 128], strides = [1, 1]} : vector<6x128xf32> to vector<1x128xf32>
    %8 = vector.broadcast %6 : vector<16x1xf32> to vector<16x128xf32>
    %9 = vector.broadcast %7 : vector<1x128xf32> to vector<16x128xf32>
    %10 = arith.mulf %8, %9 : vector<16x128xf32>
    %11 = vector.broadcast %1 : vector<1x128xf32> to vector<16x128xf32>
    %12 = arith.addf %11, %10 : vector<16x128xf32>
    %13 = vector.extract_strided_slice %4 {offsets = [0, 1], sizes = [16, 1], strides = [1, 1]} : vector<16x3xf32> to vector<16x1xf32>
    %14 = vector.extract_strided_slice %0 {offsets = [1, 0], sizes = [1, 128], strides = [1, 1]} : vector<6x128xf32> to vector<1x128xf32>
    %15 = vector.broadcast %13 : vector<16x1xf32> to vector<16x128xf32>
    %16 = vector.broadcast %14 : vector<1x128xf32> to vector<16x128xf32>
    %17 = arith.mulf %15, %16 : vector<16x128xf32>
    %18 = arith.addf %12, %17 : vector<16x128xf32>
    %19 = vector.extract_strided_slice %4 {offsets = [0, 2], sizes = [16, 1], strides = [1, 1]} : vector<16x3xf32> to vector<16x1xf32>
    %20 = vector.extract_strided_slice %0 {offsets = [2, 0], sizes = [1, 128], strides = [1, 1]} : vector<6x128xf32> to vector<1x128xf32>
    %21 = vector.broadcast %19 : vector<16x1xf32> to vector<16x128xf32>
    %22 = vector.broadcast %20 : vector<1x128xf32> to vector<16x128xf32>
    %23 = arith.mulf %21, %22 : vector<16x128xf32>
    %24 = arith.addf %18, %23 : vector<16x128xf32>
    %25 = vector.extract_strided_slice %5 {offsets = [0, 0], sizes = [16, 1], strides = [1, 1]} : vector<16x3xf32> to vector<16x1xf32>
    %26 = vector.extract_strided_slice %0 {offsets = [3, 0], sizes = [1, 128], strides = [1, 1]} : vector<6x128xf32> to vector<1x128xf32>
    %27 = vector.broadcast %25 : vector<16x1xf32> to vector<16x128xf32>
    %28 = vector.broadcast %26 : vector<1x128xf32> to vector<16x128xf32>
    %29 = arith.mulf %27, %28 : vector<16x128xf32>
    %30 = arith.addf %24, %29 : vector<16x128xf32>
    %31 = vector.extract_strided_slice %5 {offsets = [0, 1], sizes = [16, 1], strides = [1, 1]} : vector<16x3xf32> to vector<16x1xf32>
    %32 = vector.extract_strided_slice %0 {offsets = [4, 0], sizes = [1, 128], strides = [1, 1]} : vector<6x128xf32> to vector<1x128xf32>
    %33 = vector.broadcast %31 : vector<16x1xf32> to vector<16x128xf32>
    %34 = vector.broadcast %32 : vector<1x128xf32> to vector<16x128xf32>
    %35 = arith.mulf %33, %34 : vector<16x128xf32>
    %36 = arith.addf %30, %35 : vector<16x128xf32>
    %37 = vector.extract_strided_slice %5 {offsets = [0, 2], sizes = [16, 1], strides = [1, 1]} : vector<16x3xf32> to vector<16x1xf32>
    %38 = vector.extract_strided_slice %0 {offsets = [5, 0], sizes = [1, 128], strides = [1, 1]} : vector<6x128xf32> to vector<1x128xf32>
    %39 = vector.broadcast %37 : vector<16x1xf32> to vector<16x128xf32>
    %40 = vector.broadcast %38 : vector<1x128xf32> to vector<16x128xf32>
    %41 = arith.mulf %39, %40 : vector<16x128xf32>
    %42 = arith.addf %36, %41 : vector<16x128xf32>
    %cst = arith.constant 0.000000e+00 : f32
    %43 = vector.broadcast %cst : f32 to vector<16x128xf32>
    %44 = arith.maximumf %42, %43 : vector<16x128xf32>
    %45 = arith.truncf %44 : vector<16x128xf32> to vector<16x128xbf16>
    %cst_11 = arith.constant dense<0.000000e+00> : vector<16x128xf32>
    %46 = tpu.matmul %45, %2, %cst_11 {dimension_numbers = #tpu.dot_dimension_numbers<[1], [0], [0], [1], [0, 0, 1, 1], [], []>} : vector<16x128xbf16>, vector<128x128xbf16>, vector<16x128xf32> -> vector<16x128xf32>
    %47 = vector.broadcast %3 : vector<1x128xf32> to vector<16x128xf32>
    %48 = arith.addf %46, %47 : vector<16x128xf32>
    %49 = arith.truncf %48 : vector<16x128xf32> to vector<16x128xbf16>
    %c0_12 = arith.constant 0 : index
    %c0_13 = arith.constant 0 : index
    %50 = vector.load %arg8[%c0_12, %c0_13] : memref<16x128xbf16, #tpu.memory_space<vmem>>, vector<16x128xbf16>
    tpu.vector_store %arg8[%c0_12, %c0_13], %49 {strides = array<i32>} : memref<16x128xbf16, #tpu.memory_space<vmem>>, vector<16x128xbf16>,
    %c0_14 = arith.constant 0 : index
    %c0_15 = arith.constant 0 : index
    %51 = vector.load %arg2[%c0_14, %c0_15] : memref<16x3xf32, #tpu.memory_space<vmem>>, vector<16x3xf32>
    %c0_16 = arith.constant 0 : index
    %c0_17 = arith.constant 0 : index
    %52 = vector.load %arg3[%c0_16, %c0_17] : memref<16x3xf32, #tpu.memory_space<vmem>>, vector<16x3xf32>
    %53 = vector.extract_strided_slice %51 {offsets = [0, 0], sizes = [16, 1], strides = [1, 1]} : vector<16x3xf32> to vector<16x1xf32>
    %54 = vector.extract_strided_slice %0 {offsets = [0, 0], sizes = [1, 128], strides = [1, 1]} : vector<6x128xf32> to vector<1x128xf32>
    %55 = vector.broadcast %53 : vector<16x1xf32> to vector<16x128xf32>
    %56 = vector.broadcast %54 : vector<1x128xf32> to vector<16x128xf32>
    %57 = arith.mulf %55, %56 : vector<16x128xf32>
    %58 = vector.broadcast %1 : vector<1x128xf32> to vector<16x128xf32>
    %59 = arith.addf %58, %57 : vector<16x128xf32>
    %60 = vector.extract_strided_slice %51 {offsets = [0, 1], sizes = [16, 1], strides = [1, 1]} : vector<16x3xf32> to vector<16x1xf32>
    %61 = vector.extract_strided_slice %0 {offsets = [1, 0], sizes = [1, 128], strides = [1, 1]} : vector<6x128xf32> to vector<1x128xf32>
    %62 = vector.broadcast %60 : vector<16x1xf32> to vector<16x128xf32>
    %63 = vector.broadcast %61 : vector<1x128xf32> to vector<16x128xf32>
    %64 = arith.mulf %62, %63 : vector<16x128xf32>
    %65 = arith.addf %59, %64 : vector<16x128xf32>
    %66 = vector.extract_strided_slice %51 {offsets = [0, 2], sizes = [16, 1], strides = [1, 1]} : vector<16x3xf32> to vector<16x1xf32>
    %67 = vector.extract_strided_slice %0 {offsets = [2, 0], sizes = [1, 128], strides = [1, 1]} : vector<6x128xf32> to vector<1x128xf32>
    %68 = vector.broadcast %66 : vector<16x1xf32> to vector<16x128xf32>
    %69 = vector.broadcast %67 : vector<1x128xf32> to vector<16x128xf32>
    %70 = arith.mulf %68, %69 : vector<16x128xf32>
    %71 = arith.addf %65, %70 : vector<16x128xf32>
    %72 = vector.extract_strided_slice %52 {offsets = [0, 0], sizes = [16, 1], strides = [1, 1]} : vector<16x3xf32> to vector<16x1xf32>
    %73 = vector.extract_strided_slice %0 {offsets = [3, 0], sizes = [1, 128], strides = [1, 1]} : vector<6x128xf32> to vector<1x128xf32>
    %74 = vector.broadcast %72 : vector<16x1xf32> to vector<16x128xf32>
    %75 = vector.broadcast %73 : vector<1x128xf32> to vector<16x128xf32>
    %76 = arith.mulf %74, %75 : vector<16x128xf32>
    %77 = arith.addf %71, %76 : vector<16x128xf32>
    %78 = vector.extract_strided_slice %52 {offsets = [0, 1], sizes = [16, 1], strides = [1, 1]} : vector<16x3xf32> to vector<16x1xf32>
    %79 = vector.extract_strided_slice %0 {offsets = [4, 0], sizes = [1, 128], strides = [1, 1]} : vector<6x128xf32> to vector<1x128xf32>
    %80 = vector.broadcast %78 : vector<16x1xf32> to vector<16x128xf32>
    %81 = vector.broadcast %79 : vector<1x128xf32> to vector<16x128xf32>
    %82 = arith.mulf %80, %81 : vector<16x128xf32>
    %83 = arith.addf %77, %82 : vector<16x128xf32>
    %84 = vector.extract_strided_slice %52 {offsets = [0, 2], sizes = [16, 1], strides = [1, 1]} : vector<16x3xf32> to vector<16x1xf32>
    %85 = vector.extract_strided_slice %0 {offsets = [5, 0], sizes = [1, 128], strides = [1, 1]} : vector<6x128xf32> to vector<1x128xf32>
    %86 = vector.broadcast %84 : vector<16x1xf32> to vector<16x128xf32>
    %87 = vector.broadcast %85 : vector<1x128xf32> to vector<16x128xf32>
    %88 = arith.mulf %86, %87 : vector<16x128xf32>
    %89 = arith.addf %83, %88 : vector<16x128xf32>
    %cst_18 = arith.constant 0.000000e+00 : f32
    %90 = vector.broadcast %cst_18 : f32 to vector<16x128xf32>
    %91 = arith.maximumf %89, %90 : vector<16x128xf32>
    %92 = arith.truncf %91 : vector<16x128xf32> to vector<16x128xbf16>
    %cst_19 = arith.constant dense<0.000000e+00> : vector<16x128xf32>
    %93 = tpu.matmul %92, %2, %cst_19 {dimension_numbers = #tpu.dot_dimension_numbers<[1], [0], [0], [1], [0, 0, 1, 1], [], []>} : vector<16x128xbf16>, vector<128x128xbf16>, vector<16x128xf32> -> vector<16x128xf32>
    %94 = vector.broadcast %3 : vector<1x128xf32> to vector<16x128xf32>
    %95 = arith.addf %93, %94 : vector<16x128xf32>
    %96 = arith.truncf %95 : vector<16x128xf32> to vector<16x128xbf16>
    %c0_20 = arith.constant 0 : index
    %c0_21 = arith.constant 0 : index
    %97 = vector.load %arg9[%c0_20, %c0_21] : memref<16x128xbf16, #tpu.memory_space<vmem>>, vector<16x128xbf16>
    tpu.vector_store %arg9[%c0_20, %c0_21], %96 {strides = array<i32>} : memref<16x128xbf16, #tpu.memory_space<vmem>>, vector<16x128xbf16>,
    return
  }
}

</mosaic_0001>

<bundles_post_ra>
// kernel: tpu_custom_call.1
= control target key start
LH: loop header
LB: loop body
LE: loop exit
PB: predicated region body
PF: predicated region fallthrough
CT: control target
= control target key end

     0   :  { %15 = vsyncpa [#allocation3], 0  ;;  %v597_v2 = vmov 0   ;;  %s737_s0 = inlined_call_operand.vmem [shape: f32[16,3], index: 0, kind: input, shape index: {}]   ;;  %s738_s1 = inlined_call_operand.vmem [shape: f32[16,3], index: 1, kind: input, shape index: {}]   ;;  %s739_s2 = inlined_call_operand.vmem [shape: f32[16,3], index: 2, kind: input, shape index: {}]   ;;  %s740_s3 = inlined_call_operand.vmem [shape: f32[16,3], index: 3, kind: input, shape index: {}]   ;;  %s741_s4 = inlined_call_operand.vmem [shape: f32[6,128], index: 4, kind: input, shape index: {}]   ;;  %s742_s5 = inlined_call_operand.vmem [shape: f32[1,128], index: 5, kind: input, shape index: {}]   ;;  %s743_s6 = inlined_call_operand.vmem [shape: bf16[128,128], index: 6, kind: input, shape index: {}]   ;;  %s744_s7 = inlined_call_operand.vmem [shape: f32[1,128], index: 7, kind: input, shape index: {}]   ;;  %s745_s8 = inlined_call_operand.hbm [shape: bf16[16,128], index: 8, kind: output, shape index: {0}]   ;;  %s746_s9 = inlined_call_operand.hbm [shape: bf16[16,128], index: 9, kind: output, shape index: {1}]  }
   0x1   :  { %v271_v0 = vld [vmem:[%s739_s2] sm:$0xff]  ;;  %533 = vset.pattern.permute.xlu1 %v597_v2  ;;  %532 = vset.pattern.permute.xlu0 %v597_v2  ;;  %v272_v3 = vld [vmem:[%s739_s2 + $0x8] sm:$0xff] }
   0x2   :  { %v53_v1 = vld [vmem:[%s737_s0] sm:$0xff]  ;;  %277 = vperm.xlu1 %533, %v271_v0   ;;  %v54_v4 = vld [vmem:[%s737_s0 + $0x8] sm:$0xff] }
   0x3   :  { %59 = vperm.xlu0 %532, %v53_v1   ;;  %v55_v5 = vld [vmem:[%s738_s1] sm:$0xff] }
   0x6   :  { %282 = vperm.xlu1 %533, %v272_v3  }
   0x7   :  { %64 = vperm.xlu0 %532, %v54_v4  }
   0x8   :  { %16 = vsyncpa [#allocation5], 0  ;;  %v598_v6 = vmov 1   ;;  %v274_v7 = vld [vmem:[%s740_s3 + $0x8] sm:$0xff]  ;;  %v599_v8 = vmov 2   ;;  %v541_v10 = vld [vmem:[%s743_s6] sm:$0xff]   ;;  %v67_v28 = vlaneseq }
   0x9   :  { %v56_v9 = vld [vmem:[%s738_s1 + $0x8] sm:$0xff]  ;;  %v600_v11 = vmov 0.0   ;;  %v273_v12 = vld [vmem:[%s740_s3] sm:$0xff]  ;;  %v543_v14 = vld [vmem:[%s743_s6 + $0x10] sm:$0xff]   ;;  %vm601_vm0 = vmmov 0   ;;  %s602_s19 = smov [#allocation2]  }
   0xa   :  { %534 = vset.pattern.permute.xlu1 %v598_v6  ;;  %483 = vmatprep.subr.bf16.mxu0 %v600_v11  ;;  %v542_v13 = vld [vmem:[%s743_s6 + $0x8] sm:$0xff]   ;;  %v544_v15 = vld [vmem:[%s743_s6 + $0x18] sm:$0xff]   ;;  %v545_v16 = vld [vmem:[%s743_s6 + $0x20] sm:$0xff]   ;;  %v68_v31 = vshrl.u32 %v67_v28, 7  ;;  %s410_s20 = sshll.u32 %s602_s19, 4  ;;  %s603_s0 = smov [#allocation4]   ;;  %s411_s20 = int_to_ptr.vmem [resolvable:$true] %s410_s20 }
   0xb   :  { %115 = vperm.xlu0 %532, %v55_v5   ;;  %86 = vperm.xlu1 %534, %v54_v4   ;;  %v546_v17 = vld [vmem:[%s743_s6 + $0x28] sm:$0xff]   ;;  %v547_v18 = vld [vmem:[%s743_s6 + $0x30] sm:$0xff]   ;;  %v548_v19 = vld [vmem:[%s743_s6 + $0x38] sm:$0xff]   ;;  %s422_s2 = sshll.u32 %s603_s0, 4  ;;  %p554_p1 = scmp.lt.s32.totalorder %s411_s20, %s411_s20  ;;  %s423_s2 = int_to_ptr.vmem [resolvable:$true] %s422_s2 }
   0xc   :  { %484 = vmatpush3.bf16.msra.mxu0 %v541_v10  ;;  %503 = vmatprep.subr.bf16.mxu1 %v600_v11  ;;  %v69_v33 = vsub.s32 0, %v68_v31  ;;  %v34_v34 = vld [vmem:[%s741_s4] sm:$0x3f]  ;;  %v91_v38 = vsub.s32 1, %v68_v31  ;;  %v107_v40 = vsub.s32 2, %v68_v31  ;;  %v125_v50 = vsub.s32 3, %v68_v31 }
   0xd   :  { %485 = vmatprep.subr.bf16.mxu0 %v600_v11  ;;  %504 = vmatpush3.bf16.msra.mxu1 %v541_v10  ;;  %v437_v44 = vld [vmem:[%s742_s5] ss:$0 sm:$0xff]  ;;  %v141_v51 = vsub.s32 4, %v68_v31  ;;  %v157_v59 = vsub.s32 5, %v68_v31 }
   0xe   :  { %505 = vmatprep.subr.bf16.mxu1 %v600_v11  ;;  %499 = vmatprep.mubr.msk.bf16.mxu0 %vm601_vm0, %v600_v11  ;;  %v70_v37 = vrot.slane %v34_v34, %v69_v33  ;;  %v92_v43 = vrot.slane %v34_v34, %v91_v38  ;;  %v108_v48 = vrot.slane %v34_v34, %v107_v40 }
   0xf   :  { %320 = vperm.xlu0 %532, %v274_v7   ;;  %290 = vperm.xlu1 %534, %v271_v0   ;;  %v126_v60 = vrot.slane %v34_v34, %v125_v50  ;;  %v438_v50 = vld [vmem:[%s744_s7] ss:$0 sm:$0xff]  ;;  %s549_s7 = scalar_lea.vmem %s411_s20, 128 }
  0x10   :  { %486 = vmatpush3.bf16.msra.mxu0 %v542_v13  ;;  %519 = vmatprep.mubr.msk.bf16.mxu1 %vm601_vm0, %v600_v11  ;;  %p550_p0 = scmp.ne.s32.totalorder %s411_s20, %s549_s7  ;;  %p555_p2 = scmp.lt.s32.totalorder %s549_s7, %s549_s7 }
  0x11   :  { %487 = vmatprep.subr.bf16.mxu0 %v600_v11  ;;  %506 = vmatpush3.bf16.msra.mxu1 %v542_v13 }
  0x12   :  { %507 = vmatprep.subr.bf16.mxu1 %v600_v11  ;;  %p556_p3 = por %p555_p2, %p554_p1 }
  0x13   :  { %537 = vset.pattern.permute.xlu0 %v598_v6  ;;  %535 = vset.pattern.permute.xlu1 %v599_v8 }
  0x14   :  { %82 = vperm.xlu0 %537, %v53_v1   ;;  %98 = vperm.xlu1 %535, %v53_v1   ;;  %v142_v1 = vrot.slane %v34_v34, %v141_v51  ;;  %p557_p4 = pnand %p556_p3, %p550_p0 }
  0x15   :  { %488 = vmatpush3.bf16.msra.mxu0 %v543_v14  ;;  %508 = vmatpush3.bf16.msra.mxu1 %v543_v14 }
  0x16   :  { %489 = vmatprep.subr.bf16.mxu0 %v600_v11  ;;  %509 = vmatprep.subr.bf16.mxu1 %v600_v11 }
  0x18   :  { %294 = vperm.xlu0 %537, %v272_v3   ;;  %302 = vperm.xlu1 %535, %v271_v0  }
  0x19   :  { %490 = vmatpush3.bf16.msra.mxu0 %v544_v15  ;;  %510 = vmatpush3.bf16.msra.mxu1 %v544_v15 }
  0x1a   :  { %491 = vmatprep.subr.bf16.mxu0 %v600_v11  ;;  %511 = vmatprep.subr.bf16.mxu1 %v600_v11 }
  0x1c   :  { %136 = vperm.xlu0 %537, %v56_v9   ;;  %306 = vperm.xlu1 %535, %v272_v3  }
  0x1d   :  { %492 = vmatpush3.bf16.msra.mxu0 %v545_v16  ;;  %512 = vmatpush3.bf16.msra.mxu1 %v545_v16 }
  0x1e   :  { %493 = vmatprep.subr.bf16.mxu0 %v600_v11  ;;  %513 = vmatprep.subr.bf16.mxu1 %v600_v11 }
  0x20   :  { %539 = vset.pattern.permute.xlu0 %v599_v8  ;;  %536 = vset.pattern.permute.xlu1 %v597_v2 }
  0x21   :  { %102 = vperm.xlu0 %539, %v54_v4   ;;  %120 = vperm.xlu1 %536, %v56_v9  }
  0x22   :  { %494 = vmatpush3.bf16.msra.mxu0 %v546_v17  ;;  %514 = vmatpush3.bf16.msra.mxu1 %v546_v17 }
  0x23   :  { %495 = vmatprep.subr.bf16.mxu0 %v600_v11  ;;  %515 = vmatprep.subr.bf16.mxu1 %v600_v11 }
  0x25   :  { %148 = vperm.xlu0 %539, %v55_v5   ;;  %315 = vperm.xlu1 %536, %v273_v12  }
  0x26   :  { %496 = vmatpush3.bf16.msra.mxu0 %v547_v18  ;;  %516 = vmatpush3.bf16.msra.mxu1 %v547_v18 }
  0x27   :  { %497 = vmatprep.subr.bf16.mxu0 %v600_v11  ;;  %517 = vmatprep.subr.bf16.mxu1 %v600_v11 }
  0x29   :  { %344 = vperm.xlu0 %539, %v274_v7   ;;  %538 = vset.pattern.permute.xlu1 %v598_v6 }
  0x2a   :  { %132 = vperm.xlu1 %538, %v55_v5   ;;  %498 = vmatpush3.bf16.msra.mxu0 %v548_v19  ;;  %v158_v5 = vrot.slane %v34_v34, %v157_v59 }
  0x2b   :  { %518 = vmatpush3.bf16.msra.mxu1 %v548_v19 }
  0x2e   :  { %328 = vperm.xlu1 %538, %v273_v12  }
  0x32   :  { %332 = vperm.xlu1 %538, %v274_v7  }
  0x36   :  { %540 = vset.pattern.permute.xlu1 %v599_v8 }
  0x37   :  { %152 = vperm.xlu1 %540, %v56_v9  }
  0x3b   :  { %340 = vperm.xlu1 %540, %v273_v12  }
  0x81   :  { %v278_v20 = vpop.permute.xlu1 %277 }
  0x82   :  { %v60_v21 = vpop.permute.xlu0 %59  ;;  %v285_v2 = vmul.f32 %v278_v20, %v70_v37 }
  0x83   :  { %v71_v39 = vmul.f32 %v70_v37, %v60_v21 }
  0x84   :  { %v287_v15 = vadd.f32 %v437_v44, %v285_v2 }
  0x85   :  { %v283_v22 = vpop.permute.xlu1 %282  ;;  %v79_v45 = vadd.f32 %v437_v44, %v71_v39 }
  0x86   :  { %v65_v23 = vpop.permute.xlu0 %64  ;;  %v286_v57 = vmul.f32 %v283_v22, %v70_v37 }
  0x87   :  { %v72_v46 = vmul.f32 %v70_v37, %v65_v23 }
  0x88   :  { %v288_v3 = vadd.f32 %v437_v44, %v286_v57 }
  0x89   :  { %v80_v53 = vadd.f32 %v437_v44, %v72_v46 }
  0x8a   :  { %v116_v24 = vpop.permute.xlu0 %115  ;;  %v87_v25 = vpop.permute.xlu1 %86 }
  0x8b   :  { %v94_v54 = vmul.f32 %v92_v43, %v87_v25  ;;  %v127_v7 = vmul.f32 %v126_v60, %v116_v24 }
  0x8d   :  { %v96_v63 = vadd.f32 %v94_v54, %v80_v53 }
  0x8e   :  { %v291_v26 = vpop.permute.xlu1 %290  ;;  %v321_v27 = vpop.permute.xlu0 %320 }
  0x8f   :  { %v297_v13 = vmul.f32 %v291_v26, %v92_v43  ;;  %v324_v23 = vmul.f32 %v321_v27, %v126_v60 }
  0x91   :  { %v299_v28 = vadd.f32 %v297_v13, %v287_v15 }
  0x93   :  { %v99_v29 = vpop.permute.xlu1 %98  ;;  %v83_v30 = vpop.permute.xlu0 %82 }
  0x94   :  { %v93_v47 = vmul.f32 %v92_v43, %v83_v30  ;;  %v109_v56 = vmul.f32 %v108_v48, %v99_v29 }
  0x96   :  { %v95_v55 = vadd.f32 %v93_v47, %v79_v45 }
  0x97   :  { %v303_v32 = vpop.permute.xlu1 %302  ;;  %v295_v35 = vpop.permute.xlu0 %294 }
  0x98   :  { %v298_v62 = vmul.f32 %v295_v35, %v92_v43  ;;  %v111_v0 = vadd.f32 %v109_v56, %v95_v55  ;;  %v309_v16 = vmul.f32 %v303_v32, %v108_v48 }
  0x9a   :  { %v300_v11 = vadd.f32 %v298_v62, %v288_v3  ;;  %v129_v14 = vadd.f32 %v127_v7, %v111_v0  ;;  %v311_v31 = vadd.f32 %v309_v16, %v299_v28 }
  0x9b   :  { %v307_v36 = vpop.permute.xlu1 %306  ;;  %v137_v42 = vpop.permute.xlu0 %136 }
  0x9c   :  { %v310_v4 = vmul.f32 %v307_v36, %v108_v48  ;;  %v144_v19 = vmul.f32 %v142_v1, %v137_v42 }
  0x9e   :  { %v312_v17 = vadd.f32 %v310_v4, %v300_v11 }
  0xa0   :  { %v121_v41 = vpop.permute.xlu1 %120  ;;  %v103_v52 = vpop.permute.xlu0 %102  ;;  %v326_v30 = vadd.f32 %v324_v23, %v312_v17 }
  0xa1   :  { %v110_v61 = vmul.f32 %v108_v48, %v103_v52  ;;  %v128_v9 = vmul.f32 %v126_v60, %v121_v41 }
  0xa3   :  { %v112_v8 = vadd.f32 %v110_v61, %v96_v63 }
  0xa4   :  { %v316_v49 = vpop.permute.xlu1 %315  ;;  %v149_v12 = vpop.permute.xlu0 %148 }
  0xa5   :  { %v130_v21 = vadd.f32 %v128_v9, %v112_v8  ;;  %v159_v20 = vmul.f32 %v158_v5, %v149_v12  ;;  %v323_v24 = vmul.f32 %v316_v49, %v126_v60 }
  0xa7   :  { %v146_v35 = vadd.f32 %v144_v19, %v130_v21  ;;  %v325_v38 = vadd.f32 %v323_v24, %v311_v31 }
  0xa8   :  { %v345_v29 = vpop.permute.xlu0 %344 }
  0xa9   :  { %v133_v58 = vpop.permute.xlu1 %132  ;;  %v348_v37 = vmul.f32 %v345_v29, %v158_v5 }
  0xaa   :  { %v143_v10 = vmul.f32 %v142_v1, %v133_v58 }
  0xac   :  { %v145_v22 = vadd.f32 %v143_v10, %v129_v14 }
  0xad   :  { %v329_v6 = vpop.permute.xlu1 %328 }
  0xae   :  { %v161_v33 = vadd.f32 %v159_v20, %v145_v22  ;;  %v335_v26 = vmul.f32 %v329_v6, %v142_v1 }
  0xb0   :  { %v163_v40 = vmax.f32 %v161_v33, 0.0  ;;  %v337_v42 = vadd.f32 %v335_v26, %v325_v38 }
  0xb1   :  { %v333_v18 = vpop.permute.xlu1 %332 }
  0xb2   :  { %v336_v25 = vmul.f32 %v333_v18, %v142_v1 }
  0xb4   :  { %v338_v36 = vadd.f32 %v336_v25, %v326_v30 }
  0xb6   :  { %v153_v34 = vpop.permute.xlu1 %152  ;;  %v350_v43 = vadd.f32 %v348_v37, %v338_v36 }
  0xb7   :  { %v160_v32 = vmul.f32 %v158_v5, %v153_v34 }
  0xb8   :  { %v352_v47 = vmax.f32 %v350_v43, 0.0 }
  0xb9   :  { %v162_v39 = vadd.f32 %v160_v32, %v146_v35 }
  0xba   :  { %v341_v41 = vpop.permute.xlu1 %340 }
  0xbb   :  { %v164_v27 = vmax.f32 %v162_v39, 0.0  ;;  %v347_v44 = vmul.f32 %v341_v41, %v158_v5 }
  0xbd   :  { %v349_v45 = vadd.f32 %v347_v44, %v337_v42  ;;  %v165_v46 = vpack.c.bf16 %v164_v27, %v163_v40 }
  0xbf   :  { %v351_v48 = vmax.f32 %v349_v45, 0.0  ;;  %500 = vmatmul.mubr.bf16.vlgmr.msra.gmra.mrb[0].mxu0 %v165_v46 }
  0xc1   :  { %v353_v49 = vpack.c.bf16 %v352_v47, %v351_v48 }
  0xc3   :  { %520 = vmatmul.mubr.bf16.vlgmr.msra.gmra.mrb[0].mxu1 %v353_v49 }
 0x192   :  { %v254_v51 = vpop.f32.mrb[0].mxu0 }
 0x193   :  { %v501_v52 = vpop.f32.mrb[1].mxu0  ;;  %v255_v54 = vadd.f32 %v438_v50, %v254_v51 }
 0x194   :  { %v257_v53 = vpop.f32.mrb[2].mxu0 }
 0x195   :  { %v258_v55 = vadd.f32 %v438_v50, %v257_v53  ;;  %v502_v56 = vpop.f32.mrb[3].mxu0 }
 0x196   :  { %v388_v57 = vpop.f32.mrb[0].mxu1 }
 0x197   :  { %v458_v58 = vpack.c.bf16 %v258_v55, %v255_v54  ;;  %v521_v59 = vpop.f32.mrb[1].mxu1  ;;  %v389_v61 = vadd.f32 %v438_v50, %v388_v57 }
 0x198   :  { %v391_v60 = vpop.f32.mrb[2].mxu1 }
 0x199   :  { %459 = vst [vmem:[#allocation2] sm:$0xff] %v458_v58   ;;  %v392_v62 = vadd.f32 %v438_v50, %v391_v60  ;;  %v522_v63 = vpop.f32.mrb[3].mxu1 }
 0x19a   :  { %560 = shalt.err (!%p557_p4)
}
 0x19b   :  { %s561_s23 = scalar_lea.hbm %s745_s8, 128 }
 0x19c   :  { %p562_p5 = scmp.ne.s32.totalorder %s745_s8, %s561_s23  ;;  %p565_p6 = scmp.lt.u32.totalorder %s561_s23, %s745_s8 }
 0x19e   :  { %p567_p7 = pnand %p565_p6, %p562_p5 }
 0x1a0   :  { %570 = shalt.err (!%p567_p7)
}
 0x1a1   :  { %s604_s27 = smov 64   ;;  %s605_s3 = smov 4   ;;  %v463_v0 = vpack.c.bf16 %v392_v62, %v389_v61 }
 0x1a2   :  { %416 = dma.vmem_to_hbm [thread:$0]  %s411_s20, 128, %s745_s8, [#allocation3], %s604_s27, %s604_s27, %s605_s3  }
 0x1a3   :  { %464 = vst [vmem:[#allocation4] sm:$0xff] %v463_v0   ;;  %s571_s30 = scalar_lea.vmem %s423_s2, 128  ;;  %p576_p9 = scmp.lt.s32.totalorder %s423_s2, %s423_s2 }
 0x1a4   :  { %p572_p8 = scmp.ne.s32.totalorder %s423_s2, %s571_s30  ;;  %p577_p10 = scmp.lt.s32.totalorder %s571_s30, %s571_s30 }
 0x1a6   :  { %p578_p11 = por %p577_p10, %p576_p9 }
 0x1a8   :  { %p579_p12 = pnand %p578_p11, %p572_p8 }
 0x1aa   :  { %582 = shalt.err (!%p579_p12)
}
 0x1ab   :  { %s583_s12 = scalar_lea.hbm %s746_s9, 128 }
 0x1ac   :  { %p584_p13 = scmp.ne.s32.totalorder %s746_s9, %s583_s12  ;;  %p587_p0 = scmp.lt.u32.totalorder %s583_s12, %s746_s9 }
 0x1ae   :  { %p589_p1 = pnand %p587_p0, %p584_p13 }
 0x1b0   :  { %592 = shalt.err (!%p589_p1)
}
 0x1b1   :  { %428 = dma.vmem_to_hbm [thread:$0]  %s423_s2, 128, %s746_s9, [#allocation5], %s604_s27, %s604_s27, %s605_s3  }
 0x1b2   :  { %593 = dma.done.wait [#allocation3], 128  }
 0x1b3   :  { %594 = vsyncadd [#allocation3], 4294967168 }
 0x1b4   :  { %595 = dma.done.wait [#allocation5], 128  }
 0x1b5   :  { %596 = vsyncadd [#allocation5], 4294967168 }
 0x1b6   :  { %435 = vsyncpa [#allocation3], 1 }
 0x1b7   :  { %436 = vsyncpa [#allocation5], 1 }

</bundles_post_ra>
